<compile_context>
chip_gen: v7x
topology: tpu7x:2x2x1
jax: 0.10.0
libtpu: 0.0.40
codegen_flags: <defaults>
</compile_context>

<pallas_src>
import functools

import jax
import jax.numpy as jnp
from jax import lax
from jax.experimental import pallas as pl
from jax.experimental.pallas import tpu as pltpu
import numpy as np


def rnn_kernel(x_ref, wih_ref, whh_ref, b_ref, wfc_ref, bfc_ref, o_ref,
               xproj_ref, h_ref, *, t_total, unroll):
    """One grid step = one time chunk.

    x_ref     : (Tc, Bp, Ip)  time-major, zero-padded input chunk
    wih_ref   : (Ip, Hp)      input->hidden weight (pre-transposed, padded)
    whh_ref   : (Hp, Hp)      hidden->hidden weight (pre-transposed, padded)
    b_ref     : (1, Hp)       b_ih + b_hh (combined, padded)
    wfc_ref   : (Hp, Op)      final Linear weight (pre-transposed, padded)
    bfc_ref   : (1, Op)       final Linear bias (padded)
    o_ref     : (Bp, Op)      lane-dense padded output (written on last chunk)
    xproj_ref : (Tc, Bp, Hp)  VMEM scratch: per-chunk x @ W_ih + b
    h_ref     : (Bp, Hp)      VMEM scratch: hidden state carried across chunks
    """
    chunk = pl.program_id(0)
    Tc, Bp, Ip = x_ref.shape
    Hp = whh_ref.shape[0]

    @pl.when(chunk == 0)
    def _():
        h_ref[...] = jnp.zeros_like(h_ref)          # h0 = zeros, like the PyTorch module

    # ---- Per-chunk hoisted input projection: one well-shaped matmul off the
    #      serial path (throughput-bound, overlapped with nothing serial).
    x_flat = x_ref[...].reshape(Tc * Bp, Ip)
    xproj_ref[...] = (
        jnp.dot(x_flat, wih_ref[...], preferred_element_type=jnp.float32)
        + b_ref[...]
    ).reshape(Tc, Bp, Hp)

    # ---- Recurrence: only h @ W_hh + tanh per serial step.  h lives in the
    #      fori_loop carry (vregs); no per-step VMEM round-trip.
    whh = whh_ref[...]
    t0 = chunk * Tc

    def step(t, h):
        pre = xproj_ref[t] + jnp.dot(h, whh, preferred_element_type=jnp.float32)
        h_new = jnp.tanh(pre)
        valid = (t0 + t) < t_total                  # mask padded tail timesteps
        return jnp.where(valid, h_new, h)

    h = lax.fori_loop(0, Tc, step, h_ref[...], unroll=unroll)
    h_ref[...] = h                                  # persist across grid steps

    # ---- Epilogue on the last chunk: final Linear, lane-dense store.
    @pl.when(chunk == pl.num_programs(0) - 1)
    def _():
        o_ref[...] = (
            jnp.dot(h, wfc_ref[...], preferred_element_type=jnp.float32)
            + bfc_ref[...]
        ).astype(o_ref.dtype)


def _round_up(v, m):
    return ((v + m - 1) // m) * m


def rnn_model_forward(x, w_ih, w_hh, b_ih, b_hh, w_fc, b_fc, *, time_chunk=None):
    """x: (B, T, I). Weights follow PyTorch conventions:
       w_ih (H, I), w_hh (H, H), b_ih (H,), b_hh (H,), w_fc (O, H), b_fc (O,)."""
    B, T, I = x.shape
    H = w_hh.shape[0]
    O = w_fc.shape[0]

    # (8, 128)-friendly padded sizes: B on sublanes, I/H/O on lanes.
    Bp = _round_up(max(B, 8), 8)
    Ip = _round_up(max(I, 128), 128)
    Hp = _round_up(max(H, 128), 128)
    Op = _round_up(max(O, 128), 128)

    f32 = jnp.float32

    # Time chunk: keep x (double-buffered) + xproj well under the scoped VMEM
    # budget on every generation (v5e 16 MiB default, v7x 64 MiB physical).
    if time_chunk is None:
        budget = 12 << 20                            # bytes for x dbl-buffer + xproj
        bytes_per_t = Bp * (2 * Ip + Hp) * 4
        time_chunk = max(1, min(T, budget // bytes_per_t, 512))
    Tc = int(time_chunk)
    Tpad = _round_up(T, Tc)
    n_chunks = Tpad // Tc

    # Time-major + zero pad (batch/feature/time) in one fused XLA pass over x.
    x_tm = jnp.pad(
        jnp.transpose(x, (1, 0, 2)).astype(f32),
        ((0, Tpad - T), (0, Bp - B), (0, Ip - I)),
    )

    # Pre-transposed, zero-padded weights (f32 so the 1e-5 check holds).
    wih_p = jnp.zeros((Ip, Hp), f32).at[:I, :H].set(w_ih.T.astype(f32))
    whh_p = jnp.zeros((Hp, Hp), f32).at[:H, :H].set(w_hh.T.astype(f32))
    b_p = jnp.zeros((1, Hp), f32).at[0, :H].set((b_ih + b_hh).astype(f32))
    wfc_p = jnp.zeros((Hp, Op), f32).at[:H, :O].set(w_fc.T.astype(f32))
    bfc_p = jnp.zeros((1, Op), f32).at[0, :O].set(b_fc.astype(f32))

    kernel = functools.partial(rnn_kernel, t_total=T, unroll=min(8, Tc))

    # Explicit scoped-VMEM limit with headroom (16 MiB floor for tiny shapes,
    # 32 MiB cap = safe on all of v5e/v6e/v7x).
    vmem_need = 4 * (
        2 * Tc * Bp * Ip                 # x chunk, double-buffered
        + Tc * Bp * Hp                   # xproj scratch
        + Bp * Hp                        # h scratch
        + 2 * (Ip * Hp + Hp * Hp + Hp * Op + Hp + Op)   # resident weights/biases
        + 2 * Bp * Op                    # output
    )
    vmem_limit = int(min(max(2 * vmem_need, 16 << 20), 32 << 20))

    out_p = pl.pallas_call(
        kernel,
        out_shape=jax.ShapeDtypeStruct((Bp, Op), f32),
        grid_spec=pltpu.PrefetchScalarGridSpec(
            num_scalar_prefetch=0,
            grid=(n_chunks,),
            in_specs=[
                pl.BlockSpec((Tc, Bp, Ip), lambda c: (c, 0, 0)),   # streamed x chunks
                pl.BlockSpec((Ip, Hp), lambda c: (0, 0)),          # resident weights
                pl.BlockSpec((Hp, Hp), lambda c: (0, 0)),
                pl.BlockSpec((1, Hp), lambda c: (0, 0)),
                pl.BlockSpec((Hp, Op), lambda c: (0, 0)),
                pl.BlockSpec((1, Op), lambda c: (0, 0)),
            ],
            out_specs=pl.BlockSpec((Bp, Op), lambda c: (0, 0)),
            scratch_shapes=[
                pltpu.VMEM((Tc, Bp, Hp), f32),   # per-chunk input projection
                pltpu.VMEM((Bp, Hp), f32),       # hidden state, persists across chunks
            ],
        ),
        compiler_params=pltpu.CompilerParams(
            dimension_semantics=("arbitrary",),   # serial recurrence across chunks
            vmem_limit_bytes=vmem_limit,
        ),
    )(x_tm, wih_p, whh_p, b_p, wfc_p, bfc_p)

    # Strip padding -> (B, O), exactly the PyTorch module's output.
    return out_p[:B, :O].astype(x.dtype)


def _reference_forward(x, w_ih, w_hh, b_ih, b_hh, w_fc, b_fc):
    """Pure-numpy reference matching torch.nn.RNN(tanh, batch_first) + Linear."""
    x = np.asarray(x)
    B, T, I = x.shape
    H = w_hh.shape[0]
    h = np.zeros((B, H), dtype=np.float32)
    for t in range(T):
        h = np.tanh(x[:, t, :] @ np.asarray(w_ih).T + np.asarray(b_ih)
                    + h @ np.asarray(w_hh).T + np.asarray(b_hh))
    return h @ np.asarray(w_fc).T + np.asarray(b_fc)


if __name__ == "__main__":
    # Small shapes consistent with the module's forward.
    B, T = 2, 8          # batch, sequence length
    I, H, O = 4, 32, 8   # input_size, hidden_size, output_size

    key = jax.random.PRNGKey(0)
    ks = jax.random.split(key, 7)
    bound = 1.0 / np.sqrt(H)   # PyTorch default init range for RNN/Linear params

    x = jax.random.normal(ks[0], (B, T, I), dtype=jnp.float32)
    w_ih = jax.random.uniform(ks[1], (H, I), minval=-bound, maxval=bound, dtype=jnp.float32)
    w_hh = jax.random.uniform(ks[2], (H, H), minval=-bound, maxval=bound, dtype=jnp.float32)
    b_ih = jax.random.uniform(ks[3], (H,), minval=-bound, maxval=bound, dtype=jnp.float32)
    b_hh = jax.random.uniform(ks[4], (H,), minval=-bound, maxval=bound, dtype=jnp.float32)
    w_fc = jax.random.uniform(ks[5], (O, H), minval=-bound, maxval=bound, dtype=jnp.float32)
    b_fc = jax.random.uniform(ks[6], (O,), minval=-bound, maxval=bound, dtype=jnp.float32)

    ref = _reference_forward(x, w_ih, w_hh, b_ih, b_hh, w_fc, b_fc)

    # Single-chunk path (whole sequence in one grid step).
    out = rnn_model_forward(x, w_ih, w_hh, b_ih, b_hh, w_fc, b_fc)
    out = jax.block_until_ready(out)
    np.testing.assert_allclose(np.asarray(out), ref, rtol=1e-5, atol=1e-5)

    # Multi-chunk path (exercises hidden-state carry across grid steps and
    # padded-tail masking: T=8, Tc=3 -> chunks of 3/3/2 valid timesteps).
    out_chunked = rnn_model_forward(x, w_ih, w_hh, b_ih, b_hh, w_fc, b_fc, time_chunk=3)
    out_chunked = jax.block_until_ready(out_chunked)
    np.testing.assert_allclose(np.asarray(out_chunked), ref, rtol=1e-5, atol=1e-5)

    print("KERNEL_OK")
</pallas_src>

<mosaic_0001>
module attributes {stable_mosaic.version = 11 : i64} {
  func.func @rnn_kernel(%arg0: i32, %arg1: memref<8x8x128xf32, #tpu.memory_space<vmem>>, %arg2: memref<128x128xf32, #tpu.memory_space<vmem>>, %arg3: memref<128x128xf32, #tpu.memory_space<vmem>>, %arg4: memref<1x128xf32, #tpu.memory_space<vmem>>, %arg5: memref<128x128xf32, #tpu.memory_space<vmem>>, %arg6: memref<1x128xf32, #tpu.memory_space<vmem>>, %arg7: memref<8x128xf32, #tpu.memory_space<vmem>>, %arg8: memref<8x8x128xf32, #tpu.memory_space<vmem>>, %arg9: memref<8x128xf32, #tpu.memory_space<vmem>>) attributes {dimension_semantics = [#tpu.dimension_semantics<arbitrary>], iteration_bounds = array<i64: 1>, scalar_prefetch = 0 : i64, scratch_operands = 2 : i64, tpu.core_type = #tpu.core_type<tc>, window_params = [{transform_indices = @transform_0, window_bounds = array<i64: 8, 8, 128>}, {pipeline_mode = #tpu.pipeline_mode<synchronous>, transform_indices = @transform_1, window_bounds = array<i64: 128, 128>}, {pipeline_mode = #tpu.pipeline_mode<synchronous>, transform_indices = @transform_2, window_bounds = array<i64: 128, 128>}, {pipeline_mode = #tpu.pipeline_mode<synchronous>, transform_indices = @transform_3, window_bounds = array<i64: 1, 128>}, {pipeline_mode = #tpu.pipeline_mode<synchronous>, transform_indices = @transform_4, window_bounds = array<i64: 128, 128>}, {pipeline_mode = #tpu.pipeline_mode<synchronous>, transform_indices = @transform_5, window_bounds = array<i64: 1, 128>}, {pipeline_mode = #tpu.pipeline_mode<synchronous>, transform_indices = @transform_6, window_bounds = array<i64: 8, 128>}]} {
    %c0_i32 = arith.constant 0 : i32
    %0 = arith.cmpi eq, %arg0, %c0_i32 : i32
    %1 = arith.extui %0 : i1 to i32
    %c0_i32_0 = arith.constant 0 : i32
    %2 = arith.cmpi ne, %1, %c0_i32_0 : i32
    scf.if %2 {
      %cst_52 = arith.constant 0.000000e+00 : f32
      %91 = vector.broadcast %cst_52 : f32 to vector<8x128xf32>
      %c0_53 = arith.constant 0 : index
      %c0_54 = arith.constant 0 : index
      %92 = vector.load %arg9[%c0_53, %c0_54] : memref<8x128xf32, #tpu.memory_space<vmem>>, vector<8x128xf32>
      tpu.vector_store %arg9[%c0_53, %c0_54], %91 {strides = array<i32>} : memref<8x128xf32, #tpu.memory_space<vmem>>, vector<8x128xf32>,
    } else {
    }
    %c0 = arith.constant 0 : index
    %c0_1 = arith.constant 0 : index
    %c0_2 = arith.constant 0 : index
    %3 = vector.load %arg1[%c0, %c0_1, %c0_2] : memref<8x8x128xf32, #tpu.memory_space<vmem>>, vector<8x8x128xf32>
    %4 = vector.shape_cast %3 : vector<8x8x128xf32> to vector<64x128xf32>
    %c0_3 = arith.constant 0 : index
    %c0_4 = arith.constant 0 : index
    %5 = vector.load %arg2[%c0_3, %c0_4] : memref<128x128xf32, #tpu.memory_space<vmem>>, vector<128x128xf32>
    %cst = arith.constant dense<0.000000e+00> : vector<64x128xf32>
    %6 = tpu.matmul %4, %5, %cst {dimension_numbers = #tpu.dot_dimension_numbers<[1], [0], [0], [1], [0, 0, 1, 1], [], []>} : vector<64x128xf32>, vector<128x128xf32>, vector<64x128xf32> -> vector<64x128xf32>
    %c0_5 = arith.constant 0 : index
    %c0_6 = arith.constant 0 : index
    %7 = vector.load %arg4[%c0_5, %c0_6] : memref<1x128xf32, #tpu.memory_space<vmem>>, vector<1x128xf32>
    %8 = vector.broadcast %7 : vector<1x128xf32> to vector<64x128xf32>
    %9 = arith.addf %6, %8 : vector<64x128xf32>
    %10 = vector.shape_cast %9 : vector<64x128xf32> to vector<8x8x128xf32>
    %c0_7 = arith.constant 0 : index
    %c0_8 = arith.constant 0 : index
    %c0_9 = arith.constant 0 : index
    %11 = vector.load %arg8[%c0_7, %c0_8, %c0_9] : memref<8x8x128xf32, #tpu.memory_space<vmem>>, vector<8x8x128xf32>
    tpu.vector_store %arg8[%c0_7, %c0_8, %c0_9], %10 {strides = array<i32>} : memref<8x8x128xf32, #tpu.memory_space<vmem>>, vector<8x8x128xf32>,
    %c0_10 = arith.constant 0 : index
    %c0_11 = arith.constant 0 : index
    %12 = vector.load %arg3[%c0_10, %c0_11] : memref<128x128xf32, #tpu.memory_space<vmem>>, vector<128x128xf32>
    %c8_i32 = arith.constant 8 : i32
    %13 = arith.muli %arg0, %c8_i32 : i32
    %c0_12 = arith.constant 0 : index
    %c0_13 = arith.constant 0 : index
    %14 = vector.load %arg9[%c0_12, %c0_13] : memref<8x128xf32, #tpu.memory_space<vmem>>, vector<8x128xf32>
    %c0_i32_14 = arith.constant 0 : i32
    %15 = arith.index_cast %c0_i32_14 : i32 to index
    %c0_15 = arith.constant 0 : index
    %c0_16 = arith.constant 0 : index
    %16 = vector.load %arg8[%15, %c0_15, %c0_16] : memref<8x8x128xf32, #tpu.memory_space<vmem>>, vector<1x8x128xf32>
    %17 = vector.shape_cast %16 : vector<1x8x128xf32> to vector<8x128xf32>
    %cst_17 = arith.constant dense<0.000000e+00> : vector<8x128xf32>
    %18 = tpu.matmul %14, %12, %cst_17 {dimension_numbers = #tpu.dot_dimension_numbers<[1], [0], [0], [1], [0, 0, 1, 1], [], []>} : vector<8x128xf32>, vector<128x128xf32>, vector<8x128xf32> -> vector<8x128xf32>
    %19 = arith.addf %17, %18 : vector<8x128xf32>
    %20 = math.tanh %19 : vector<8x128xf32>
    %21 = arith.addi %13, %c0_i32_14 : i32
    %c8_i32_18 = arith.constant 8 : i32
    %22 = arith.cmpi slt, %21, %c8_i32_18 : i32
    %23 = arith.select %22, %20, %14 : vector<8x128xf32>
    %c1_i32 = arith.constant 1 : i32
    %24 = arith.index_cast %c1_i32 : i32 to index
    %c0_19 = arith.constant 0 : index
    %c0_20 = arith.constant 0 : index
    %25 = vector.load %arg8[%24, %c0_19, %c0_20] : memref<8x8x128xf32, #tpu.memory_space<vmem>>, vector<1x8x128xf32>
    %26 = vector.shape_cast %25 : vector<1x8x128xf32> to vector<8x128xf32>
    %cst_21 = arith.constant dense<0.000000e+00> : vector<8x128xf32>
    %27 = tpu.matmul %23, %12, %cst_21 {dimension_numbers = #tpu.dot_dimension_numbers<[1], [0], [0], [1], [0, 0, 1, 1], [], []>} : vector<8x128xf32>, vector<128x128xf32>, vector<8x128xf32> -> vector<8x128xf32>
    %28 = arith.addf %26, %27 : vector<8x128xf32>
    %29 = math.tanh %28 : vector<8x128xf32>
    %30 = arith.addi %13, %c1_i32 : i32
    %c8_i32_22 = arith.constant 8 : i32
    %31 = arith.cmpi slt, %30, %c8_i32_22 : i32
    %32 = arith.select %31, %29, %23 : vector<8x128xf32>
    %c2_i32 = arith.constant 2 : i32
    %33 = arith.index_cast %c2_i32 : i32 to index
    %c0_23 = arith.constant 0 : index
    %c0_24 = arith.constant 0 : index
    %34 = vector.load %arg8[%33, %c0_23, %c0_24] : memref<8x8x128xf32, #tpu.memory_space<vmem>>, vector<1x8x128xf32>
    %35 = vector.shape_cast %34 : vector<1x8x128xf32> to vector<8x128xf32>
    %cst_25 = arith.constant dense<0.000000e+00> : vector<8x128xf32>
    %36 = tpu.matmul %32, %12, %cst_25 {dimension_numbers = #tpu.dot_dimension_numbers<[1], [0], [0], [1], [0, 0, 1, 1], [], []>} : vector<8x128xf32>, vector<128x128xf32>, vector<8x128xf32> -> vector<8x128xf32>
    %37 = arith.addf %35, %36 : vector<8x128xf32>
    %38 = math.tanh %37 : vector<8x128xf32>
    %39 = arith.addi %13, %c2_i32 : i32
    %c8_i32_26 = arith.constant 8 : i32
    %40 = arith.cmpi slt, %39, %c8_i32_26 : i32
    %41 = arith.select %40, %38, %32 : vector<8x128xf32>
    %c3_i32 = arith.constant 3 : i32
    %42 = arith.index_cast %c3_i32 : i32 to index
    %c0_27 = arith.constant 0 : index
    %c0_28 = arith.constant 0 : index
    %43 = vector.load %arg8[%42, %c0_27, %c0_28] : memref<8x8x128xf32, #tpu.memory_space<vmem>>, vector<1x8x128xf32>
    %44 = vector.shape_cast %43 : vector<1x8x128xf32> to vector<8x128xf32>
    %cst_29 = arith.constant dense<0.000000e+00> : vector<8x128xf32>
    %45 = tpu.matmul %41, %12, %cst_29 {dimension_numbers = #tpu.dot_dimension_numbers<[1], [0], [0], [1], [0, 0, 1, 1], [], []>} : vector<8x128xf32>, vector<128x128xf32>, vector<8x128xf32> -> vector<8x128xf32>
    %46 = arith.addf %44, %45 : vector<8x128xf32>
    %47 = math.tanh %46 : vector<8x128xf32>
    %48 = arith.addi %13, %c3_i32 : i32
    %c8_i32_30 = arith.constant 8 : i32
    %49 = arith.cmpi slt, %48, %c8_i32_30 : i32
    %50 = arith.select %49, %47, %41 : vector<8x128xf32>
    %c4_i32 = arith.constant 4 : i32
    %51 = arith.index_cast %c4_i32 : i32 to index
    %c0_31 = arith.constant 0 : index
    %c0_32 = arith.constant 0 : index
    %52 = vector.load %arg8[%51, %c0_31, %c0_32] : memref<8x8x128xf32, #tpu.memory_space<vmem>>, vector<1x8x128xf32>
    %53 = vector.shape_cast %52 : vector<1x8x128xf32> to vector<8x128xf32>
    %cst_33 = arith.constant dense<0.000000e+00> : vector<8x128xf32>
    %54 = tpu.matmul %50, %12, %cst_33 {dimension_numbers = #tpu.dot_dimension_numbers<[1], [0], [0], [1], [0, 0, 1, 1], [], []>} : vector<8x128xf32>, vector<128x128xf32>, vector<8x128xf32> -> vector<8x128xf32>
    %55 = arith.addf %53, %54 : vector<8x128xf32>
    %56 = math.tanh %55 : vector<8x128xf32>
    %57 = arith.addi %13, %c4_i32 : i32
    %c8_i32_34 = arith.constant 8 : i32
    %58 = arith.cmpi slt, %57, %c8_i32_34 : i32
    %59 = arith.select %58, %56, %50 : vector<8x128xf32>
    %c5_i32 = arith.constant 5 : i32
    %60 = arith.index_cast %c5_i32 : i32 to index
    %c0_35 = arith.constant 0 : index
    %c0_36 = arith.constant 0 : index
    %61 = vector.load %arg8[%60, %c0_35, %c0_36] : memref<8x8x128xf32, #tpu.memory_space<vmem>>, vector<1x8x128xf32>
    %62 = vector.shape_cast %61 : vector<1x8x128xf32> to vector<8x128xf32>
    %cst_37 = arith.constant dense<0.000000e+00> : vector<8x128xf32>
    %63 = tpu.matmul %59, %12, %cst_37 {dimension_numbers = #tpu.dot_dimension_numbers<[1], [0], [0], [1], [0, 0, 1, 1], [], []>} : vector<8x128xf32>, vector<128x128xf32>, vector<8x128xf32> -> vector<8x128xf32>
    %64 = arith.addf %62, %63 : vector<8x128xf32>
    %65 = math.tanh %64 : vector<8x128xf32>
    %66 = arith.addi %13, %c5_i32 : i32
    %c8_i32_38 = arith.constant 8 : i32
    %67 = arith.cmpi slt, %66, %c8_i32_38 : i32
    %68 = arith.select %67, %65, %59 : vector<8x128xf32>
    %c6_i32 = arith.constant 6 : i32
    %69 = arith.index_cast %c6_i32 : i32 to index
    %c0_39 = arith.constant 0 : index
    %c0_40 = arith.constant 0 : index
    %70 = vector.load %arg8[%69, %c0_39, %c0_40] : memref<8x8x128xf32, #tpu.memory_space<vmem>>, vector<1x8x128xf32>
    %71 = vector.shape_cast %70 : vector<1x8x128xf32> to vector<8x128xf32>
    %cst_41 = arith.constant dense<0.000000e+00> : vector<8x128xf32>
    %72 = tpu.matmul %68, %12, %cst_41 {dimension_numbers = #tpu.dot_dimension_numbers<[1], [0], [0], [1], [0, 0, 1, 1], [], []>} : vector<8x128xf32>, vector<128x128xf32>, vector<8x128xf32> -> vector<8x128xf32>
    %73 = arith.addf %71, %72 : vector<8x128xf32>
    %74 = math.tanh %73 : vector<8x128xf32>
    %75 = arith.addi %13, %c6_i32 : i32
    %c8_i32_42 = arith.constant 8 : i32
    %76 = arith.cmpi slt, %75, %c8_i32_42 : i32
    %77 = arith.select %76, %74, %68 : vector<8x128xf32>
    %c7_i32 = arith.constant 7 : i32
    %78 = arith.index_cast %c7_i32 : i32 to index
    %c0_43 = arith.constant 0 : index
    %c0_44 = arith.constant 0 : index
    %79 = vector.load %arg8[%78, %c0_43, %c0_44] : memref<8x8x128xf32, #tpu.memory_space<vmem>>, vector<1x8x128xf32>
    %80 = vector.shape_cast %79 : vector<1x8x128xf32> to vector<8x128xf32>
    %cst_45 = arith.constant dense<0.000000e+00> : vector<8x128xf32>
    %81 = tpu.matmul %77, %12, %cst_45 {dimension_numbers = #tpu.dot_dimension_numbers<[1], [0], [0], [1], [0, 0, 1, 1], [], []>} : vector<8x128xf32>, vector<128x128xf32>, vector<8x128xf32> -> vector<8x128xf32>
    %82 = arith.addf %80, %81 : vector<8x128xf32>
    %83 = math.tanh %82 : vector<8x128xf32>
    %84 = arith.addi %13, %c7_i32 : i32
    %c8_i32_46 = arith.constant 8 : i32
    %85 = arith.cmpi slt, %84, %c8_i32_46 : i32
    %86 = arith.select %85, %83, %77 : vector<8x128xf32>
    %c8_i32_47 = arith.constant 8 : i32
    %c0_48 = arith.constant 0 : index
    %c0_49 = arith.constant 0 : index
    %87 = vector.load %arg9[%c0_48, %c0_49] : memref<8x128xf32, #tpu.memory_space<vmem>>, vector<8x128xf32>
    tpu.vector_store %arg9[%c0_48, %c0_49], %86 {strides = array<i32>} : memref<8x128xf32, #tpu.memory_space<vmem>>, vector<8x128xf32>,
    %c0_i32_50 = arith.constant 0 : i32
    %88 = arith.cmpi eq, %arg0, %c0_i32_50 : i32
    %89 = arith.extui %88 : i1 to i32
    %c0_i32_51 = arith.constant 0 : i32
    %90 = arith.cmpi ne, %89, %c0_i32_51 : i32
    scf.if %90 {
      %c0_52 = arith.constant 0 : index
      %c0_53 = arith.constant 0 : index
      %91 = vector.load %arg5[%c0_52, %c0_53] : memref<128x128xf32, #tpu.memory_space<vmem>>, vector<128x128xf32>
      %cst_54 = arith.constant dense<0.000000e+00> : vector<8x128xf32>
      %92 = tpu.matmul %86, %91, %cst_54 {dimension_numbers = #tpu.dot_dimension_numbers<[1], [0], [0], [1], [0, 0, 1, 1], [], []>} : vector<8x128xf32>, vector<128x128xf32>, vector<8x128xf32> -> vector<8x128xf32>
      %c0_55 = arith.constant 0 : index
      %c0_56 = arith.constant 0 : index
      %93 = vector.load %arg6[%c0_55, %c0_56] : memref<1x128xf32, #tpu.memory_space<vmem>>, vector<1x128xf32>
      %94 = vector.broadcast %93 : vector<1x128xf32> to vector<8x128xf32>
      %95 = arith.addf %92, %94 : vector<8x128xf32>
      %c0_57 = arith.constant 0 : index
      %c0_58 = arith.constant 0 : index
      %96 = vector.load %arg7[%c0_57, %c0_58] : memref<8x128xf32, #tpu.memory_space<vmem>>, vector<8x128xf32>
      tpu.vector_store %arg7[%c0_57, %c0_58], %95 {strides = array<i32>} : memref<8x128xf32, #tpu.memory_space<vmem>>, vector<8x128xf32>,
    } else {
    }
    return
  }
  func.func @transform_0(%arg0: i32) -> (i32, i32, i32) {
    %c0_i32 = arith.constant 0 : i32
    %c0_i32_0 = arith.constant 0 : i32
    %c0_i32_1 = arith.constant 0 : i32
    return %arg0, %c0_i32, %c0_i32_0 : i32, i32, i32
  }
  func.func @transform_1(%arg0: i32) -> (i32, i32) {
    %c0_i32 = arith.constant 0 : i32
    %c0_i32_0 = arith.constant 0 : i32
    %c0_i32_1 = arith.constant 0 : i32
    return %c0_i32, %c0_i32_0 : i32, i32
  }
  func.func @transform_2(%arg0: i32) -> (i32, i32) {
    %c0_i32 = arith.constant 0 : i32
    %c0_i32_0 = arith.constant 0 : i32
    %c0_i32_1 = arith.constant 0 : i32
    return %c0_i32, %c0_i32_0 : i32, i32
  }
  func.func @transform_3(%arg0: i32) -> (i32, i32) {
    %c0_i32 = arith.constant 0 : i32
    %c0_i32_0 = arith.constant 0 : i32
    %c0_i32_1 = arith.constant 0 : i32
    return %c0_i32, %c0_i32_0 : i32, i32
  }
  func.func @transform_4(%arg0: i32) -> (i32, i32) {
    %c0_i32 = arith.constant 0 : i32
    %c0_i32_0 = arith.constant 0 : i32
    %c0_i32_1 = arith.constant 0 : i32
    return %c0_i32, %c0_i32_0 : i32, i32
  }
  func.func @transform_5(%arg0: i32) -> (i32, i32) {
    %c0_i32 = arith.constant 0 : i32
    %c0_i32_0 = arith.constant 0 : i32
    %c0_i32_1 = arith.constant 0 : i32
    return %c0_i32, %c0_i32_0 : i32, i32
  }
  func.func @transform_6(%arg0: i32) -> (i32, i32) {
    %c0_i32 = arith.constant 0 : i32
    %c0_i32_0 = arith.constant 0 : i32
    %c0_i32_1 = arith.constant 0 : i32
    return %c0_i32, %c0_i32_0 : i32, i32
  }
}

</mosaic_0001>

<bundles_post_ra>
// kernel: tpu_custom_call.1
= control target key start
LH: loop header
LB: loop body
LE: loop exit
PB: predicated region body
PF: predicated region fallthrough
CT: control target
= control target key end

     0   :  { %11 = vsyncpa [#allocation5], 0  ;;  %s2259_s0 = inlined_call_operand.hbm [shape: f32[8,8,128], index: 0, kind: input, shape index: {}]   ;;  %s2260_s1 = inlined_call_operand.hbm [shape: f32[128,128], index: 1, kind: input, shape index: {}]   ;;  %s2261_s2 = inlined_call_operand.hbm [shape: f32[128,128], index: 2, kind: input, shape index: {}]   ;;  %s2262_s3 = inlined_call_operand.vmem [shape: f32[1,128], index: 3, kind: input, shape index: {}]   ;;  %s2263_s4 = inlined_call_operand.hbm [shape: f32[128,128], index: 4, kind: input, shape index: {}]   ;;  %s2264_s5 = inlined_call_operand.vmem [shape: f32[1,128], index: 5, kind: input, shape index: {}]   ;;  %s2265_s6 = inlined_call_operand.hbm [shape: f32[8,128], index: 6, kind: output, shape index: {}]  }
   0x1   :  { %12 = vsyncpa [#allocation8], 0 }
   0x2   :  { %13 = vsyncpa [#allocation11], 0 }
   0x3   :  { %14 = vsyncpa [#allocation6], 0  ;;  %s1929_s21 = smov [#allocation7]   ;;  %s1930_s23 = smov [#allocation4]  }
   0x4   :  { %s32_s22 = sshll.u32 %s1929_s21, 4  ;;  %s20_s24 = sshll.u32 %s1930_s23, 4  ;;  %s33_s22 = int_to_ptr.vmem [resolvable:$true] %s32_s22  ;;  %s1974_s24 = int_to_ptr.vmem [resolvable:$true] %s20_s24 }
   0x5   :  { %s1811_s27 = scalar_lea.hbm %s2260_s1, 2048 }
   0x6   :  { %p1812_p0 = scmp.ne.s32.totalorder %s2260_s1, %s1811_s27  ;;  %p1815_p1 = scmp.lt.u32.totalorder %s1811_s27, %s2260_s1 }
   0x8   :  { %p1817_p2 = pnand %p1815_p1, %p1812_p0 }
   0xa   :  { %1820 = shalt.err (!%p1817_p2)
}
   0xb   :  { %s1821_s8 = scalar_lea.vmem %s33_s22, 2048  ;;  %p1826_p4 = scmp.lt.s32.totalorder %s33_s22, %s33_s22 }
   0xc   :  { %p1822_p3 = scmp.ne.s32.totalorder %s33_s22, %s1821_s8  ;;  %p1827_p5 = scmp.lt.s32.totalorder %s1821_s8, %s1821_s8 }
   0xe   :  { %p1828_p6 = por %p1827_p5, %p1826_p4 }
  0x10   :  { %p1829_p7 = pnand %p1828_p6, %p1822_p3 }
  0x12   :  { %1832 = shalt.err (!%p1829_p7)
}
  0x13   :  { %s1931_s9 = smov 128   ;;  %s1932_s10 = smov 8  }
  0x14   :  { %38 = dma.hbm_to_vmem [thread:$0]  %s2260_s1, 2048, %s33_s22, [#allocation8], %s1931_s9, %s1931_s9, %s1932_s10  }
  0x15   :  { %s1833_s15 = scalar_lea.hbm %s2259_s0, 1024 }
  0x16   :  { %p1834_p8 = scmp.ne.s32.totalorder %s2259_s0, %s1833_s15  ;;  %p1837_p9 = scmp.lt.u32.totalorder %s1833_s15, %s2259_s0 }
  0x18   :  { %p1839_p10 = pnand %p1837_p9, %p1834_p8 }
  0x1a   :  { %1842 = shalt.err (!%p1839_p10)
}
  0x1b   :  { %s1843_s20 = scalar_lea.vmem %s1974_s24, 1024  ;;  %p1848_p12 = scmp.lt.s32.totalorder %s1974_s24, %s1974_s24 }
  0x1c   :  { %p1844_p11 = scmp.ne.s32.totalorder %s1974_s24, %s1843_s20  ;;  %p1849_p13 = scmp.lt.s32.totalorder %s1843_s20, %s1843_s20 }
  0x1e   :  { %p1850_p0 = por %p1849_p13, %p1848_p12 }
  0x20   :  { %p1851_p1 = pnand %p1850_p0, %p1844_p11 }
  0x22   :  { %1854 = shalt.err (!%p1851_p1)
}
  0x23   :  { %26 = dma.hbm_to_vmem [thread:$0]  %s2259_s0, 1024, %s1974_s24, [#allocation5], %s1931_s9, %s1931_s9, %s1932_s10  }
  0x24   :  { %s1933_s22 = smov [#allocation9]   ;;  %s1934_s25 = smov [#allocation10]  }
  0x25   :  { %s44_s23 = sshll.u32 %s1933_s22, 4  ;;  %s58_s26 = sshll.u32 %s1934_s25, 4  ;;  %s45_s23 = int_to_ptr.vmem [resolvable:$true] %s44_s23  ;;  %s2011_s26 = int_to_ptr.vmem [resolvable:$true] %s58_s26 }
  0x26   :  { %s1855_s29 = scalar_lea.hbm %s2261_s2, 2048 }
  0x27   :  { %p1856_p2 = scmp.ne.s32.totalorder %s2261_s2, %s1855_s29  ;;  %p1859_p3 = scmp.lt.u32.totalorder %s1855_s29, %s2261_s2 }
  0x29   :  { %p1861_p4 = pnand %p1859_p3, %p1856_p2 }
  0x2b   :  { %1864 = shalt.err (!%p1861_p4)
}
  0x2c   :  { %s1865_s0 = scalar_lea.vmem %s45_s23, 2048  ;;  %p1870_p6 = scmp.lt.s32.totalorder %s45_s23, %s45_s23 }
  0x2d   :  { %p1866_p5 = scmp.ne.s32.totalorder %s45_s23, %s1865_s0  ;;  %p1871_p7 = scmp.lt.s32.totalorder %s1865_s0, %s1865_s0 }
  0x2f   :  { %p1872_p8 = por %p1871_p7, %p1870_p6 }
  0x31   :  { %p1873_p9 = pnand %p1872_p8, %p1866_p5 }
  0x33   :  { %1876 = shalt.err (!%p1873_p9)
}
  0x34   :  { %50 = dma.hbm_to_vmem [thread:$0]  %s2261_s2, 2048, %s45_s23, [#allocation8], %s1931_s9, %s1931_s9, %s1932_s10  }
  0x35   :  { %s1877_s15 = scalar_lea.hbm %s2263_s4, 2048 }
  0x36   :  { %p1878_p10 = scmp.ne.s32.totalorder %s2263_s4, %s1877_s15  ;;  %p1881_p11 = scmp.lt.u32.totalorder %s1877_s15, %s2263_s4 }
  0x38   :  { %p1883_p12 = pnand %p1881_p11, %p1878_p10 }
  0x3a   :  { %1886 = shalt.err (!%p1883_p12)
}
  0x3b   :  { %s1887_s20 = scalar_lea.vmem %s2011_s26, 2048  ;;  %p1892_p0 = scmp.lt.s32.totalorder %s2011_s26, %s2011_s26 }
  0x3c   :  { %p1888_p13 = scmp.ne.s32.totalorder %s2011_s26, %s1887_s20  ;;  %p1893_p1 = scmp.lt.s32.totalorder %s1887_s20, %s1887_s20 }
  0x3e   :  { %p1894_p2 = por %p1893_p1, %p1892_p0 }
  0x40   :  { %p1895_p3 = pnand %p1894_p2, %p1888_p13 }
  0x42   :  { %1898 = shalt.err (!%p1895_p3)
}
  0x43   :  { %64 = dma.hbm_to_vmem [thread:$0]  %s2263_s4, 2048, %s2011_s26, [#allocation11], %s1931_s9, %s1931_s9, %s1932_s10  }
  0x44   :  { %1921 = dma.done.wait [#allocation5], 1024  }
  0x45   :  { %1922 = vsyncadd [#allocation5], 4294966272 }
  0x46   :  { %1923 = dma.done.wait [#allocation8], 4096  }
  0x47   :  { %1924 = vsyncadd [#allocation8], 4294963200 }
  0x48   :  { %1925 = dma.done.wait [#allocation11], 2048  }
  0x49   :  { %1926 = vsyncadd [#allocation11], 4294965248  ;;  %v1935_v0 = vmov 0.0|0.0   ;;  %vm1936_vm0 = vmmov 0   ;;  %v1937_v1 = vmov 0.0   ;;  %v92_v2 = vld [vmem:[#allocation7] sm:$0xff] }
  0x4a   :  { %1569 = vmatprep.subr.bf16.mxu1 %v1935_v0  ;;  %1254 = vmatprep.mubr.msk.f32.mxu1 %vm1936_vm0, %v1937_v1  ;;  %v93_v3 = vld [vmem:[#allocation7 + $0x8] sm:$0xff]  ;;  %v228_v4 = vld [vmem:[#allocation9] sm:$0xff]  ;;  %v94_v7 = vld [vmem:[#allocation7 + $0x10] sm:$0xff]  ;;  %s1938_s21 = smov [#allocation12]  }
  0x4b   :  { %v1537_v5 = vpack.c.bf16 %v93_v3, %v92_v2  ;;  %v229_v6 = vld [vmem:[#allocation9 + $0x8] sm:$0xff]  ;;  %v95_v8 = vld [vmem:[#allocation7 + $0x18] sm:$0xff]  ;;  %v230_v11 = vld [vmem:[#allocation9 + $0x10] sm:$0xff]  ;;  %s988_s22 = sshll.u32 %s1938_s21, 4  ;;  %s989_s22 = int_to_ptr.vmem [resolvable:$true] %s988_s22 }
  0x4c   :  { %v2051_v9 = vpack.c.bf16 %v229_v6, %v228_v4  ;;  %v1541_v10 = vpack.c.bf16 %v95_v8, %v94_v7  ;;  %v231_v12 = vld [vmem:[#allocation9 + $0x18] sm:$0xff]  ;;  %v96_v13 = vld [vmem:[#allocation7 + $0x20] sm:$0xff]  ;;  %v97_v14 = vld [vmem:[#allocation7 + $0x28] sm:$0xff]  ;;  %s1899_s23 = scalar_lea.vmem %s989_s22, 128  ;;  %p1904_p5 = scmp.lt.s32.totalorder %s989_s22, %s989_s22 }
  0x4d   :  { %1538 = vmatprep.subr.bf16.mxu0 %v1537_v5  ;;  %v2054_v15 = vpack.c.bf16 %v231_v12, %v230_v11  ;;  %v1545_v16 = vpack.c.bf16 %v97_v14, %v96_v13  ;;  %v232_v17 = vld [vmem:[#allocation9 + $0x20] sm:$0xff]  ;;  %v233_v18 = vld [vmem:[#allocation9 + $0x28] sm:$0xff]  ;;  %v98_v19 = vld [vmem:[#allocation7 + $0x30] sm:$0xff]  ;;  %p1900_p4 = scmp.ne.s32.totalorder %s989_s22, %s1899_s23  ;;  %p1905_p6 = scmp.lt.s32.totalorder %s1899_s23, %s1899_s23 }
  0x4e   :  { %1540 = vmatpush3.bf16.msra.mxu0 %v1537_v5  ;;  %1571 = vmatpush3.bf16.msra.mxu1 %v2051_v9  ;;  %v99_v20 = vld [vmem:[#allocation7 + $0x38] sm:$0xff]  ;;  %v2058_v21 = vpack.c.bf16 %v233_v18, %v232_v17  ;;  %v234_v23 = vld [vmem:[#allocation9 + $0x30] sm:$0xff]  ;;  %v100_v25 = vld [vmem:[#allocation7 + $0x40] sm:$0xff] }
  0x4f   :  { %1542 = vmatprep.subr.bf16.mxu0 %v1541_v10  ;;  %1572 = vmatprep.subr.bf16.mxu1 %v1935_v0  ;;  %v1549_v22 = vpack.c.bf16 %v99_v20, %v98_v19  ;;  %v235_v24 = vld [vmem:[#allocation9 + $0x38] sm:$0xff]  ;;  %v101_v26 = vld [vmem:[#allocation7 + $0x48] sm:$0xff]  ;;  %v84_v27 = vld [vmem:[#allocation4] sm:$0xff]  ;;  %p1906_p7 = por %p1905_p6, %p1904_p5 }
  0x50   :  { %1210 = vmatprep.mubr.f32.mxu0 %v84_v27  ;;  %v2062_v28 = vpack.c.bf16 %v235_v24, %v234_v23  ;;  %v1553_v29 = vpack.c.bf16 %v101_v26, %v100_v25  ;;  %v236_v30 = vld [vmem:[#allocation9 + $0x40] sm:$0xff]  ;;  %v237_v31 = vld [vmem:[#allocation9 + $0x48] sm:$0xff]  ;;  %v102_v32 = vld [vmem:[#allocation7 + $0x50] sm:$0xff] }
  0x51   :  { %v103_v33 = vld [vmem:[#allocation7 + $0x58] sm:$0xff]  ;;  %v2066_v34 = vpack.c.bf16 %v237_v31, %v236_v30  ;;  %v238_v36 = vld [vmem:[#allocation9 + $0x50] sm:$0xff]  ;;  %v104_v38 = vld [vmem:[#allocation7 + $0x60] sm:$0xff]  ;;  %p1907_p8 = pnand %p1906_p7, %p1900_p4 }
  0x52   :  { %1544 = vmatpush3.bf16.msra.mxu0 %v1541_v10  ;;  %1574 = vmatpush3.bf16.msra.mxu1 %v2054_v15  ;;  %v1557_v35 = vpack.c.bf16 %v103_v33, %v102_v32  ;;  %v239_v37 = vld [vmem:[#allocation9 + $0x58] sm:$0xff]  ;;  %v105_v39 = vld [vmem:[#allocation7 + $0x68] sm:$0xff]  ;;  %v240_v42 = vld [vmem:[#allocation9 + $0x60] sm:$0xff] }
  0x53   :  { %1546 = vmatprep.subr.bf16.mxu0 %v1545_v16  ;;  %1575 = vmatprep.subr.bf16.mxu1 %v1935_v0  ;;  %v2070_v40 = vpack.c.bf16 %v239_v37, %v238_v36  ;;  %v1561_v41 = vpack.c.bf16 %v105_v39, %v104_v38  ;;  %v241_v43 = vld [vmem:[#allocation9 + $0x68] sm:$0xff]  ;;  %v106_v44 = vld [vmem:[#allocation7 + $0x70] sm:$0xff]  ;;  %v107_v45 = vld [vmem:[#allocation7 + $0x78] sm:$0xff] }
  0x54   :  { %v2074_v46 = vpack.c.bf16 %v241_v43, %v240_v42  ;;  %v1565_v47 = vpack.c.bf16 %v107_v45, %v106_v44  ;;  %v242_v48 = vld [vmem:[#allocation9 + $0x70] sm:$0xff]  ;;  %v243_v49 = vld [vmem:[#allocation9 + $0x78] sm:$0xff]  ;;  %v85_v51 = vld [vmem:[#allocation4 + $0x8] sm:$0xff] }
  0x55   :  { %v2078_v50 = vpack.c.bf16 %v243_v49, %v242_v48  ;;  %v86_v52 = vld [vmem:[#allocation4 + $0x10] sm:$0xff]  ;;  %v87_v53 = vld [vmem:[#allocation4 + $0x18] sm:$0xff]  ;;  %v88_v54 = vld [vmem:[#allocation4 + $0x20] sm:$0xff] }
  0x56   :  { %1548 = vmatpush3.bf16.msra.mxu0 %v1545_v16  ;;  %1577 = vmatpush3.bf16.msra.mxu1 %v2058_v21  ;;  %v89_v55 = vld [vmem:[#allocation4 + $0x28] sm:$0xff]  ;;  %v90_v56 = vld [vmem:[#allocation4 + $0x30] sm:$0xff]  ;;  %v91_v57 = vld [vmem:[#allocation4 + $0x38] sm:$0xff] }
  0x57   :  { %1550 = vmatprep.subr.bf16.mxu0 %v1549_v22  ;;  %1578 = vmatprep.subr.bf16.mxu1 %v1935_v0  ;;  %v2124_v58 = vld [vmem:[%s2262_s3] ss:$0 sm:$0xff]  ;;  %v889_v36 = vld [vmem:[#allocation10 + $0x8] sm:$0xff]  ;;  %v890_v37 = vld [vmem:[#allocation10 + $0x10] sm:$0xff] }
  0x58   :  { %v891_v39 = vld [vmem:[#allocation10 + $0x18] sm:$0xff]  ;;  %v893_v42 = vld [vmem:[#allocation10 + $0x28] sm:$0xff]  ;;  %v894_v44 = vld [vmem:[#allocation10 + $0x30] sm:$0xff] }
  0x59   :  { %v895_v45 = vld [vmem:[#allocation10 + $0x38] sm:$0xff] }
  0x5a   :  { %1552 = vmatpush3.bf16.msra.mxu0 %v1549_v22  ;;  %1580 = vmatpush3.bf16.msra.mxu1 %v2062_v28 }
  0x5b   :  { %1554 = vmatprep.subr.bf16.mxu0 %v1553_v29  ;;  %1581 = vmatprep.subr.bf16.mxu1 %v1935_v0 }
  0x5e   :  { %1556 = vmatpush3.bf16.msra.mxu0 %v1553_v29  ;;  %1583 = vmatpush3.bf16.msra.mxu1 %v2066_v34 }
  0x5f   :  { %1558 = vmatprep.subr.bf16.mxu0 %v1557_v35  ;;  %1584 = vmatprep.subr.bf16.mxu1 %v1935_v0 }
  0x62   :  { %1560 = vmatpush3.bf16.msra.mxu0 %v1557_v35  ;;  %1586 = vmatpush3.bf16.msra.mxu1 %v2070_v40  ;;  %v888_v35 = vld [vmem:[#allocation10] sm:$0xff] }
  0x63   :  { %1562 = vmatprep.subr.bf16.mxu0 %v1561_v41  ;;  %1587 = vmatprep.subr.bf16.mxu1 %v1935_v0  ;;  %v1762_v38 = vpack.c.bf16 %v889_v36, %v888_v35 }
  0x66   :  { %1564 = vmatpush3.bf16.msra.mxu0 %v1561_v41  ;;  %1589 = vmatpush3.bf16.msra.mxu1 %v2074_v46  ;;  %v892_v41 = vld [vmem:[#allocation10 + $0x20] sm:$0xff] }
  0x67   :  { %1566 = vmatprep.subr.bf16.mxu0 %v1565_v47  ;;  %1590 = vmatprep.subr.bf16.mxu1 %v1935_v0  ;;  %v1768_v43 = vpack.c.bf16 %v893_v42, %v892_v41 }
  0x6a   :  { %1568 = vmatpush3.bf16.msra.mxu0 %v1565_v47  ;;  %1592 = vmatpush3.bf16.msra.mxu1 %v2078_v50  ;;  %v897_v47 = vld [vmem:[#allocation10 + $0x48] sm:$0xff] }
  0x6b   :  { %1593 = vmatprep.subr.bf16.mxu0 %v1935_v0  ;;  %1617 = vmatprep.subr.bf16.mxu1 %v1935_v0 }
  0x6d   :  { %1211 = vmatmul.mubr.f32.vlgmr.msra.gmra.mrb[0].mxu0 %v85_v51  ;;  %1255 = vmatmul.mubr.f32.vlgmr.msra.gmra.mrb[0].mxu1 %v1937_v1 }
  0x6e   :  { %1595 = vmatpush3.bf16.msra.mxu0 %v2051_v9  ;;  %1619 = vmatpush3.bf16.msra.mxu1 %v2051_v9 }
  0x6f   :  { %1596 = vmatprep.subr.bf16.mxu0 %v1935_v0  ;;  %1620 = vmatprep.subr.bf16.mxu1 %v1935_v0 }
  0x70   :  { %1324 = vmatprep.mubr.msk.f32.mxu1 %vm1936_vm0, %v1937_v1  ;;  %1213 = vmatprep.mubr.f32.mxu0 %v86_v52 }
  0x71   :  { %1214 = vmatmul.mubr.f32.gmra.mrb[2].mxu0 %v87_v53 }
  0x72   :  { %1598 = vmatpush3.bf16.msra.mxu0 %v2054_v15  ;;  %1622 = vmatpush3.bf16.msra.mxu1 %v2054_v15 }
  0x73   :  { %1599 = vmatprep.subr.bf16.mxu0 %v1935_v0  ;;  %1623 = vmatprep.subr.bf16.mxu1 %v1935_v0 }
  0x74   :  { %1216 = vmatprep.mubr.f32.mxu0 %v88_v54  ;;  %v898_v54 = vld [vmem:[#allocation10 + $0x50] sm:$0xff] }
  0x75   :  { %1217 = vmatmul.mubr.f32.gmra.mrb[4].mxu0 %v89_v55  ;;  %v899_v55 = vld [vmem:[#allocation10 + $0x58] sm:$0xff] }
  0x76   :  { %1601 = vmatpush3.bf16.msra.mxu0 %v2058_v21  ;;  %1625 = vmatpush3.bf16.msra.mxu1 %v2058_v21 }
  0x77   :  { %1602 = vmatprep.subr.bf16.mxu0 %v1935_v0  ;;  %1626 = vmatprep.subr.bf16.mxu1 %v1935_v0 }
  0x78   :  { %1219 = vmatprep.mubr.f32.mxu0 %v90_v56  ;;  %v1777_v56 = vpack.c.bf16 %v899_v55, %v898_v54 }
  0x79   :  { %1220 = vmatmul.mubr.f32.gmra.mrb[6].mxu0 %v91_v57  ;;  %v900_v57 = vld [vmem:[#allocation10 + $0x60] sm:$0xff] }
  0x7a   :  { %1604 = vmatpush3.bf16.msra.mxu0 %v2062_v28  ;;  %1628 = vmatpush3.bf16.msra.mxu1 %v2062_v28 }
  0x7b   :  { %1605 = vmatprep.subr.bf16.mxu0 %v1935_v0  ;;  %1629 = vmatprep.subr.bf16.mxu1 %v1935_v0 }
  0x7c   :  { %1289 = vmatprep.mubr.msk.f32.mxu0 %vm1936_vm0, %v1937_v1 }
  0x7e   :  { %1607 = vmatpush3.bf16.msra.mxu0 %v2066_v34  ;;  %1631 = vmatpush3.bf16.msra.mxu1 %v2066_v34 }
  0x7f   :  { %1608 = vmatprep.subr.bf16.mxu0 %v1935_v0  ;;  %1632 = vmatprep.subr.bf16.mxu1 %v1935_v0 }
  0x82   :  { %1610 = vmatpush3.bf16.msra.mxu0 %v2070_v40  ;;  %1634 = vmatpush3.bf16.msra.mxu1 %v2070_v40 }
  0x83   :  { %1611 = vmatprep.subr.bf16.mxu0 %v1935_v0  ;;  %1635 = vmatprep.subr.bf16.mxu1 %v1935_v0 }
  0x86   :  { %1613 = vmatpush3.bf16.msra.mxu0 %v2074_v46  ;;  %1637 = vmatpush3.bf16.msra.mxu1 %v2074_v46 }
  0x87   :  { %1614 = vmatprep.subr.bf16.mxu0 %v1935_v0  ;;  %1638 = vmatprep.subr.bf16.mxu1 %v1935_v0 }
  0x8a   :  { %1616 = vmatpush3.bf16.msra.mxu0 %v2078_v50  ;;  %1640 = vmatpush3.bf16.msra.mxu1 %v2078_v50 }
  0x8b   :  { %1641 = vmatprep.subr.bf16.mxu0 %v1935_v0  ;;  %1665 = vmatprep.subr.bf16.mxu1 %v1935_v0 }
 0x140   :  { %v1212_v59 = vpop.f32.mrb[0].mxu0  ;;  %v313_v60 = vpop.f32.mrb[0].mxu1 }
 0x141   :  { %v181_v61 = vpop.f32.mrb[1].mxu0  ;;  %v1256_v62 = vpop.f32.mrb[1].mxu1  ;;  %v187_v11 = vadd.f32 %v1212_v59, %v2124_v58  ;;  %v901_v59 = vld [vmem:[#allocation10 + $0x68] sm:$0xff] }
 0x142   :  { %v182_v63 = vadd.f32 %v2124_v58, %v181_v61  ;;  %v902_v61 = vld [vmem:[#allocation10 + $0x70] sm:$0xff]  ;;  %v903_v62 = vld [vmem:[#allocation10 + $0x78] sm:$0xff] }
 0x144   :  { %v317_v2 = vadd.f32 %v313_v60, %v182_v63  ;;  %v1215_v4 = vpop.f32.mrb[2].mxu0  ;;  %v1780_v60 = vpack.c.bf16 %v901_v59, %v900_v57  ;;  %v1783_v63 = vpack.c.bf16 %v903_v62, %v902_v61 }
 0x145   :  { %v191_v5 = vpop.f32.mrb[3].mxu0  ;;  %v197_v23 = vadd.f32 %v1215_v4, %v2124_v58 }
 0x146   :  { %1795 = vtanh.f32 %v317_v2  ;;  %v192_v17 = vadd.f32 %v2124_v58, %v191_v5 }
 0x148   :  { %v2145_v6 = vpop.f32.mrb[4].mxu0 }
 0x149   :  { %v2147_v7 = vpop.f32.mrb[5].mxu0 }
 0x14a   :  { %v202_v29 = vadd.f32 %v2124_v58, %v2147_v7  ;;  %v1000_v7 = vld [vmem:[%s2264_s5] ss:$0 sm:$0xff] }
 0x14c   :  { %v2149_v8 = vpop.f32.mrb[6].mxu0 }
 0x14d   :  { %v2151_v10 = vpop.f32.mrb[7].mxu0  ;;  %v217_v2 = vadd.f32 %v2149_v8, %v2124_v58 }
 0x14e   :  { %v212_v49 = vadd.f32 %v2124_v58, %v2151_v10 }
 0x150   :  { %v1796_v3 = vpop.eup %1795 }
 0x151   :  { %1290 = vmatmul.mubr.f32.vlgmr.msra.gmra.mrb[8].mxu0 %v1796_v3 }
 0x152   :  { %1643 = vmatpush3.bf16.msra.mxu0 %v2051_v9  ;;  %1359 = vmatprep.mubr.msk.f32.mxu0 %vm1936_vm0, %v1937_v1 }
 0x153   :  { %1644 = vmatprep.subr.bf16.mxu0 %v1935_v0 }
 0x156   :  { %1646 = vmatpush3.bf16.msra.mxu0 %v2054_v15 }
 0x157   :  { %1647 = vmatprep.subr.bf16.mxu0 %v1935_v0 }
 0x15a   :  { %1649 = vmatpush3.bf16.msra.mxu0 %v2058_v21 }
 0x15b   :  { %1650 = vmatprep.subr.bf16.mxu0 %v1935_v0 }
 0x15e   :  { %1652 = vmatpush3.bf16.msra.mxu0 %v2062_v28 }
 0x15f   :  { %1653 = vmatprep.subr.bf16.mxu0 %v1935_v0 }
 0x162   :  { %1655 = vmatpush3.bf16.msra.mxu0 %v2066_v34 }
 0x163   :  { %1656 = vmatprep.subr.bf16.mxu0 %v1935_v0 }
 0x166   :  { %1658 = vmatpush3.bf16.msra.mxu0 %v2070_v40 }
 0x167   :  { %1659 = vmatprep.subr.bf16.mxu0 %v1935_v0 }
 0x16a   :  { %1661 = vmatpush3.bf16.msra.mxu0 %v2074_v46 }
 0x16b   :  { %1662 = vmatprep.subr.bf16.mxu0 %v1935_v0 }
 0x16e   :  { %1664 = vmatpush3.bf16.msra.mxu0 %v2078_v50 }
 0x16f   :  { %1689 = vmatprep.subr.bf16.mxu0 %v1935_v0 }
 0x224   :  { %v392_v12 = vpop.f32.mrb[8].mxu0 }
 0x225   :  { %v396_v13 = vadd.f32 %v392_v12, %v187_v11  ;;  %v1291_v14 = vpop.f32.mrb[9].mxu0 }
 0x227   :  { %1797 = vtanh.f32 %v396_v13 }
 0x231   :  { %v1798_v16 = vpop.eup %1797 }
 0x232   :  { %1325 = vmatmul.mubr.f32.vlgmr.msra.gmra.mrb[2].mxu1 %v1798_v16 }
 0x233   :  { %1667 = vmatpush3.bf16.msra.mxu1 %v2051_v9  ;;  %1394 = vmatprep.mubr.msk.f32.mxu1 %vm1936_vm0, %v1937_v1 }
 0x234   :  { %1668 = vmatprep.subr.bf16.mxu1 %v1935_v0 }
 0x237   :  { %1670 = vmatpush3.bf16.msra.mxu1 %v2054_v15 }
 0x238   :  { %1671 = vmatprep.subr.bf16.mxu1 %v1935_v0 }
 0x23b   :  { %1673 = vmatpush3.bf16.msra.mxu1 %v2058_v21 }
 0x23c   :  { %1674 = vmatprep.subr.bf16.mxu1 %v1935_v0 }
 0x23f   :  { %1676 = vmatpush3.bf16.msra.mxu1 %v2062_v28 }
 0x240   :  { %1677 = vmatprep.subr.bf16.mxu1 %v1935_v0 }
 0x243   :  { %1679 = vmatpush3.bf16.msra.mxu1 %v2066_v34 }
 0x244   :  { %1680 = vmatprep.subr.bf16.mxu1 %v1935_v0 }
 0x247   :  { %1682 = vmatpush3.bf16.msra.mxu1 %v2070_v40 }
 0x248   :  { %1683 = vmatprep.subr.bf16.mxu1 %v1935_v0 }
 0x24b   :  { %1685 = vmatpush3.bf16.msra.mxu1 %v2074_v46 }
 0x24c   :  { %1686 = vmatprep.subr.bf16.mxu1 %v1935_v0 }
 0x24f   :  { %1688 = vmatpush3.bf16.msra.mxu1 %v2078_v50 }
 0x250   :  { %1713 = vmatprep.subr.bf16.mxu1 %v1935_v0 }
 0x305   :  { %v472_v18 = vpop.f32.mrb[2].mxu1 }
 0x306   :  { %v476_v19 = vadd.f32 %v472_v18, %v192_v17  ;;  %v1326_v20 = vpop.f32.mrb[3].mxu1 }
 0x308   :  { %1799 = vtanh.f32 %v476_v19 }
 0x312   :  { %v1800_v22 = vpop.eup %1799 }
 0x313   :  { %1360 = vmatmul.mubr.f32.vlgmr.msra.gmra.mrb[10].mxu0 %v1800_v22 }
 0x314   :  { %1691 = vmatpush3.bf16.msra.mxu0 %v2051_v9  ;;  %1429 = vmatprep.mubr.msk.f32.mxu0 %vm1936_vm0, %v1937_v1 }
 0x315   :  { %1692 = vmatprep.subr.bf16.mxu0 %v1935_v0 }
 0x318   :  { %1694 = vmatpush3.bf16.msra.mxu0 %v2054_v15 }
 0x319   :  { %1695 = vmatprep.subr.bf16.mxu0 %v1935_v0 }
 0x31c   :  { %1697 = vmatpush3.bf16.msra.mxu0 %v2058_v21 }
 0x31d   :  { %1698 = vmatprep.subr.bf16.mxu0 %v1935_v0 }
 0x320   :  { %1700 = vmatpush3.bf16.msra.mxu0 %v2062_v28 }
 0x321   :  { %1701 = vmatprep.subr.bf16.mxu0 %v1935_v0 }
 0x324   :  { %1703 = vmatpush3.bf16.msra.mxu0 %v2066_v34 }
 0x325   :  { %1704 = vmatprep.subr.bf16.mxu0 %v1935_v0 }
 0x328   :  { %1706 = vmatpush3.bf16.msra.mxu0 %v2070_v40 }
 0x329   :  { %1707 = vmatprep.subr.bf16.mxu0 %v1935_v0 }
 0x32c   :  { %1709 = vmatpush3.bf16.msra.mxu0 %v2074_v46 }
 0x32d   :  { %1710 = vmatprep.subr.bf16.mxu0 %v1935_v0 }
 0x330   :  { %1712 = vmatpush3.bf16.msra.mxu0 %v2078_v50 }
 0x331   :  { %1737 = vmatprep.subr.bf16.mxu0 %v1935_v0 }
 0x3e6   :  { %v552_v24 = vpop.f32.mrb[10].mxu0 }
 0x3e7   :  { %v556_v25 = vadd.f32 %v552_v24, %v197_v23  ;;  %v1361_v26 = vpop.f32.mrb[11].mxu0 }
 0x3e9   :  { %1801 = vtanh.f32 %v556_v25 }
 0x3f3   :  { %v1802_v27 = vpop.eup %1801 }
 0x3f4   :  { %1395 = vmatmul.mubr.f32.vlgmr.msra.gmra.mrb[4].mxu1 %v1802_v27 }
 0x3f5   :  { %1715 = vmatpush3.bf16.msra.mxu1 %v2051_v9  ;;  %1464 = vmatprep.mubr.msk.f32.mxu1 %vm1936_vm0, %v1937_v1 }
 0x3f6   :  { %1716 = vmatprep.subr.bf16.mxu1 %v1935_v0 }
 0x3f9   :  { %1718 = vmatpush3.bf16.msra.mxu1 %v2054_v15 }
 0x3fa   :  { %1719 = vmatprep.subr.bf16.mxu1 %v1935_v0 }
 0x3fd   :  { %1721 = vmatpush3.bf16.msra.mxu1 %v2058_v21 }
 0x3fe   :  { %1722 = vmatprep.subr.bf16.mxu1 %v1935_v0 }
 0x401   :  { %1724 = vmatpush3.bf16.msra.mxu1 %v2062_v28 }
 0x402   :  { %1725 = vmatprep.subr.bf16.mxu1 %v1935_v0 }
 0x405   :  { %1727 = vmatpush3.bf16.msra.mxu1 %v2066_v34 }
 0x406   :  { %1728 = vmatprep.subr.bf16.mxu1 %v1935_v0 }
 0x409   :  { %1730 = vmatpush3.bf16.msra.mxu1 %v2070_v40 }
 0x40a   :  { %1731 = vmatprep.subr.bf16.mxu1 %v1935_v0 }
 0x40d   :  { %1733 = vmatpush3.bf16.msra.mxu1 %v2074_v46 }
 0x40e   :  { %1734 = vmatprep.subr.bf16.mxu1 %v1935_v0 }
 0x411   :  { %1736 = vmatpush3.bf16.msra.mxu1 %v2078_v50 }
 0x412   :  { %1761 = vmatprep.subr.bf16.mxu1 %v1935_v0 }
 0x4c7   :  { %v632_v30 = vpop.f32.mrb[4].mxu1 }
 0x4c8   :  { %v636_v31 = vadd.f32 %v632_v30, %v202_v29  ;;  %v1396_v32 = vpop.f32.mrb[5].mxu1 }
 0x4ca   :  { %1803 = vtanh.f32 %v636_v31 }
 0x4d4   :  { %v1804_v33 = vpop.eup %1803 }
 0x4d5   :  { %1430 = vmatmul.mubr.f32.vlgmr.msra.gmra.mrb[12].mxu0 %v1804_v33 }
 0x4d6   :  { %1739 = vmatpush3.bf16.msra.mxu0 %v2051_v9  ;;  %1499 = vmatprep.mubr.msk.f32.mxu0 %vm1936_vm0, %v1937_v1  ;;  %v207_v9 = vadd.f32 %v2145_v6, %v2124_v58 }
 0x4d7   :  { %1740 = vmatprep.subr.bf16.mxu0 %v1935_v0 }
 0x4da   :  { %1742 = vmatpush3.bf16.msra.mxu0 %v2054_v15 }
 0x4db   :  { %1743 = vmatprep.subr.bf16.mxu0 %v1935_v0 }
 0x4de   :  { %1745 = vmatpush3.bf16.msra.mxu0 %v2058_v21 }
 0x4df   :  { %1746 = vmatprep.subr.bf16.mxu0 %v1935_v0 }
 0x4e2   :  { %1748 = vmatpush3.bf16.msra.mxu0 %v2062_v28 }
 0x4e3   :  { %1749 = vmatprep.subr.bf16.mxu0 %v1935_v0 }
 0x4e6   :  { %1751 = vmatpush3.bf16.msra.mxu0 %v2066_v34 }
 0x4e7   :  { %1752 = vmatprep.subr.bf16.mxu0 %v1935_v0 }
 0x4ea   :  { %1754 = vmatpush3.bf16.msra.mxu0 %v2070_v40  ;;  %v1765_v40 = vpack.c.bf16 %v891_v39, %v890_v37 }
 0x4eb   :  { %1755 = vmatprep.subr.bf16.mxu0 %v1935_v0 }
 0x4ee   :  { %1757 = vmatpush3.bf16.msra.mxu0 %v2074_v46  ;;  %v1771_v46 = vpack.c.bf16 %v895_v45, %v894_v44 }
 0x4ef   :  { %1758 = vmatprep.subr.bf16.mxu0 %v1935_v0 }
 0x4f2   :  { %1760 = vmatpush3.bf16.msra.mxu0 %v2078_v50 }
 0x5a8   :  { %v712_v15 = vpop.f32.mrb[12].mxu0 }
 0x5a9   :  { %v716_v21 = vadd.f32 %v712_v15, %v207_v9  ;;  %v1431_v28 = vpop.f32.mrb[13].mxu0 }
 0x5ab   :  { %1805 = vtanh.f32 %v716_v21 }
 0x5b5   :  { %v1806_v34 = vpop.eup %1805 }
 0x5b6   :  { %1465 = vmatmul.mubr.f32.vlgmr.msra.gmra.mrb[6].mxu1 %v1806_v34 }
 0x5b7   :  { %1534 = vmatprep.mubr.msk.f32.mxu1 %vm1936_vm0, %v1937_v1  ;;  %1763 = vmatpush3.bf16.msra.mxu1 %v1762_v38  ;;  %v896_v1 = vld [vmem:[#allocation10 + $0x40] sm:$0xff] }
 0x5b8   :  { %1764 = vmatprep.subr.bf16.mxu1 %v1935_v0  ;;  %v1774_v48 = vpack.c.bf16 %v897_v47, %v896_v1 }
 0x5bb   :  { %1766 = vmatpush3.bf16.msra.mxu1 %v1765_v40 }
 0x5bc   :  { %1767 = vmatprep.subr.bf16.mxu1 %v1935_v0 }
 0x5bf   :  { %1769 = vmatpush3.bf16.msra.mxu1 %v1768_v43 }
 0x5c0   :  { %1770 = vmatprep.subr.bf16.mxu1 %v1935_v0 }
 0x5c3   :  { %1772 = vmatpush3.bf16.msra.mxu1 %v1771_v46 }
 0x5c4   :  { %1773 = vmatprep.subr.bf16.mxu1 %v1935_v0 }
 0x5c7   :  { %1775 = vmatpush3.bf16.msra.mxu1 %v1774_v48 }
 0x5c8   :  { %1776 = vmatprep.subr.bf16.mxu1 %v1935_v0 }
 0x5cb   :  { %1778 = vmatpush3.bf16.msra.mxu1 %v1777_v56 }
 0x5cc   :  { %1779 = vmatprep.subr.bf16.mxu1 %v1935_v0 }
 0x5cf   :  { %1781 = vmatpush3.bf16.msra.mxu1 %v1780_v60 }
 0x5d0   :  { %1782 = vmatprep.subr.bf16.mxu1 %v1935_v0 }
 0x5d3   :  { %1784 = vmatpush3.bf16.msra.mxu1 %v1783_v63 }
 0x689   :  { %v792_v50 = vpop.f32.mrb[6].mxu1 }
 0x68a   :  { %v796_v51 = vadd.f32 %v792_v50, %v212_v49  ;;  %v1466_v52 = vpop.f32.mrb[7].mxu1 }
 0x68c   :  { %1807 = vtanh.f32 %v796_v51 }
 0x696   :  { %v1808_v53 = vpop.eup %1807 }
 0x697   :  { %1500 = vmatmul.mubr.f32.vlgmr.msra.gmra.mrb[14].mxu0 %v1808_v53 }
 0x76a   :  { %v872_v3 = vpop.f32.mrb[14].mxu0 }
 0x76b   :  { %v876_v4 = vadd.f32 %v872_v3, %v217_v2  ;;  %v1501_v5 = vpop.f32.mrb[15].mxu0 }
 0x76d   :  { %1809 = vtanh.f32 %v876_v4 }
 0x777   :  { %v1810_v6 = vpop.eup %1809 }
 0x778   :  { %1535 = vmatmul.mubr.f32.vlgmr.msra.gmra.mrb[8].mxu1 %v1810_v6 }
 0x84b   :  { %v977_v10 = vpop.f32.mrb[8].mxu1 }
 0x84c   :  { %v978_v11 = vadd.f32 %v1000_v7, %v977_v10  ;;  %v1536_v12 = vpop.f32.mrb[9].mxu1 }
 0x84e   :  { %981 = vst [vmem:[#allocation12] sm:$0xff] %v978_v11 }
 0x84f   :  { %1910 = shalt.err (!%p1907_p8)
}
 0x850   :  { %s1911_s27 = scalar_lea.hbm %s2265_s6, 128 }
 0x851   :  { %p1912_p9 = scmp.ne.s32.totalorder %s2265_s6, %s1911_s27  ;;  %p1915_p10 = scmp.lt.u32.totalorder %s1911_s27, %s2265_s6 }
 0x853   :  { %p1917_p11 = pnand %p1915_p10, %p1912_p9 }
 0x855   :  { %1920 = shalt.err (!%p1917_p11)
}
 0x856   :  { %991 = dma.vmem_to_hbm [thread:$0]  %s989_s22, 128, %s2265_s6, [#allocation6]  }
 0x857   :  { %1927 = dma.done.wait [#allocation6], 128  }
 0x858   :  { %1928 = vsyncadd [#allocation6], 4294967168 }
 0x859   :  { %995 = vsyncpa [#allocation5], 1 }
 0x85a   :  { %996 = vsyncpa [#allocation8], 1 }
 0x85b   :  { %997 = vsyncpa [#allocation11], 1 }
 0x85c   :  { %998 = vsyncpa [#allocation6], 1 }

</bundles_post_ra>
